<compile_context>
chip_gen: v5e
topology: v5e:2x2
jax: 0.10.0
libtpu: 0.0.40
codegen_flags: <defaults>
</compile_context>

<pallas_src>
import functools
import math

import jax
import jax.numpy as jnp
from jax.experimental import pallas as pl
from jax.experimental.pallas import tpu as pltpu


def position_emb_kernel(x_ref, emb_ref, out_ref):
    x = x_ref[...]                                   # (TB, dim)
    emb = emb_ref[...]                               # (1, 2*dim) = [sin | cos]
    # One lane-dense (TB, 2*dim) result: concat the x tile with itself along
    # lanes and add the precomputed table; a single unmasked store follows.
    out = jnp.concatenate([x, x], axis=-1) + emb
    out_ref[...] = out.astype(out_ref.dtype)


def make_position_emb_consts(dim, dtype=jnp.float32):
    """One-time prepare step (outside jit): concat(sin, cos) as a (1, 2*dim) row."""
    position = jnp.arange(dim, dtype=jnp.float32)
    div_term = jnp.exp(jnp.arange(dim, dtype=jnp.float32) * -(math.log(10000.0) / dim))
    emb_sin = jnp.sin(position * div_term)
    emb_cos = jnp.cos(position * div_term)
    return jnp.concatenate([emb_sin, emb_cos]).reshape(1, 2 * dim).astype(dtype)


def _pick_block_b(batch):
    # Biggest sublane-aligned batch tile that evenly divides B (keeps blocks
    # (8,128)-legal); falls back to the whole batch for tiny/odd B.
    for tb in (512, 256, 128, 64, 32, 16, 8):
        if batch % tb == 0:
            return tb
    return batch


@functools.partial(jax.jit, static_argnames=("block_b",))
def _position_emb_forward(x, emb_row, *, block_b):
    B, dim = x.shape
    grid = (pl.cdiv(B, block_b),)
    return pl.pallas_call(
        position_emb_kernel,
        out_shape=jax.ShapeDtypeStruct((B, 2 * dim), x.dtype),
        grid_spec=pltpu.PrefetchScalarGridSpec(
            num_scalar_prefetch=0,
            grid=grid,
            in_specs=[
                pl.BlockSpec((block_b, dim), lambda i: (i, 0)),      # x tile
                pl.BlockSpec((1, 2 * dim), lambda i: (0, 0)),        # emb row (resident)
            ],
            out_specs=pl.BlockSpec((block_b, 2 * dim), lambda i: (i, 0)),
        ),
        compiler_params=pltpu.CompilerParams(
            dimension_semantics=("parallel",),
        ),
    )(x, emb_row)


def position_emb_forward(x, emb_row):
    """x: (B, dim), emb_row: (1, 2*dim) -> (B, 2*dim)."""
    return _position_emb_forward(x, emb_row, block_b=_pick_block_b(x.shape[0]))


def _reference_forward(x, dim):
    # Plain-JAX reference mirroring the PyTorch module.
    position = jnp.arange(dim, dtype=jnp.float32)
    div_term = jnp.exp(jnp.arange(dim, dtype=jnp.float32) * -(math.log(10000.0) / dim))
    emb_sin = jnp.sin(position * div_term)
    emb_cos = jnp.cos(position * div_term)
    return jnp.concatenate([x + emb_sin, x + emb_cos], axis=1)


if __name__ == "__main__":
    B, DIM = 8, 64   # output is (8, 128): full 128-lane-wide stores

    key = jax.random.PRNGKey(0)
    x = jax.random.normal(key, (B, DIM), jnp.float32)

    emb_row = make_position_emb_consts(DIM, x.dtype)   # prepared once, outside jit

    out = position_emb_forward(x, emb_row)
    out = jax.block_until_ready(out)

    ref = _reference_forward(x, DIM)
    assert out.shape == (B, 2 * DIM)
    assert jnp.allclose(out, ref, atol=1e-5, rtol=1e-5), "mismatch vs JAX reference"

    print("KERNEL_OK")
</pallas_src>

<mosaic_0001>
module attributes {stable_mosaic.version = 11 : i64} {
  func.func @position_emb_kernel(%arg0: i32, %arg1: memref<8x64xf32, #tpu.memory_space<vmem>>, %arg2: memref<1x128xf32, #tpu.memory_space<vmem>>, %arg3: memref<8x128xf32, #tpu.memory_space<vmem>>) attributes {dimension_semantics = [#tpu.dimension_semantics<parallel>], iteration_bounds = array<i64: 1>, scalar_prefetch = 0 : i64, scratch_operands = 0 : i64, tpu.core_type = #tpu.core_type<tc>, window_params = [{transform_indices = @transform_0, window_bounds = array<i64: 8, 64>}, {pipeline_mode = #tpu.pipeline_mode<synchronous>, transform_indices = @transform_1, window_bounds = array<i64: 1, 128>}, {transform_indices = @transform_2, window_bounds = array<i64: 8, 128>}]} {
    %c0 = arith.constant 0 : index
    %c0_0 = arith.constant 0 : index
    %0 = vector.load %arg1[%c0, %c0_0] : memref<8x64xf32, #tpu.memory_space<vmem>>, vector<8x64xf32>
    %c0_1 = arith.constant 0 : index
    %c0_2 = arith.constant 0 : index
    %1 = vector.load %arg2[%c0_1, %c0_2] : memref<1x128xf32, #tpu.memory_space<vmem>>, vector<1x128xf32>
    %2 = tpu.concatenate %0, %0 in 1 : vector<8x64xf32>, vector<8x64xf32> -> vector<8x128xf32>
    %3 = vector.broadcast %1 : vector<1x128xf32> to vector<8x128xf32>
    %4 = arith.addf %2, %3 : vector<8x128xf32>
    %c0_3 = arith.constant 0 : index
    %c0_4 = arith.constant 0 : index
    %5 = vector.load %arg3[%c0_3, %c0_4] : memref<8x128xf32, #tpu.memory_space<vmem>>, vector<8x128xf32>
    tpu.vector_store %arg3[%c0_3, %c0_4], %4 {strides = array<i32>} : memref<8x128xf32, #tpu.memory_space<vmem>>, vector<8x128xf32>,
    return
  }
  func.func @transform_0(%arg0: i32) -> (i32, i32) {
    %c0_i32 = arith.constant 0 : i32
    %c0_i32_0 = arith.constant 0 : i32
    return %arg0, %c0_i32 : i32, i32
  }
  func.func @transform_1(%arg0: i32) -> (i32, i32) {
    %c0_i32 = arith.constant 0 : i32
    %c0_i32_0 = arith.constant 0 : i32
    %c0_i32_1 = arith.constant 0 : i32
    return %c0_i32, %c0_i32_0 : i32, i32
  }
  func.func @transform_2(%arg0: i32) -> (i32, i32) {
    %c0_i32 = arith.constant 0 : i32
    %c0_i32_0 = arith.constant 0 : i32
    return %arg0, %c0_i32 : i32, i32
  }
}

</mosaic_0001>

<bundles_post_ra>
// kernel: _position_emb_forward.1
= control target key start
LH: loop header
LB: loop body
LE: loop exit
PB: predicated region body
PF: predicated region fallthrough
CT: control target
= control target key end

     0   :  { %7 = vsyncpa [#allocation3], 0  ;;  %s182_s0 = inlined_call_operand.hbm [shape: f32[8,64], index: 0, kind: input, shape index: {}]   ;;  %s183_s1 = inlined_call_operand.hbm [shape: f32[1,128], index: 1, kind: input, shape index: {}]   ;;  %s184_s2 = inlined_call_operand.hbm [shape: f32[8,128], index: 2, kind: output, shape index: {}]  }
   0x1   :  { %8 = vsyncpa [#allocation6], 0 }
   0x2   :  { %9 = vsyncpa [#allocation4], 0  ;;  %s15_s11 = sshll.u32 %s182_s0, 4  ;;  %s154_s12 = smov [#allocation2]   ;;  %s16_s11 = int_to_ptr.hbm [resolvable:$true] %s15_s11 }
   0x3   :  { %s17_s13 = sshll.u32 %s154_s12, 4  ;;  %s26_s16 = sshll.u32 %s183_s1, 4  ;;  %s18_s13 = int_to_ptr.vmem [resolvable:$true] %s17_s13  ;;  %s27_s16 = int_to_ptr.hbm [resolvable:$true] %s26_s16 }
   0x4   :  { %20 = dma.hbm_to_vmem [thread:$0]  %s16_s11, 128, %s18_s13, [#allocation3]  }
   0x5   :  { %s155_s17 = smov [#allocation5]  }
   0x6   :  { %s28_s18 = sshll.u32 %s155_s17, 4  ;;  %s29_s18 = int_to_ptr.vmem [resolvable:$true] %s28_s18 }
   0x7   :  { %31 = dma.hbm_to_vmem [thread:$0]  %s27_s16, 16, %s29_s18, [#allocation6]  }
   0x8   :  { %148 = dma.done.wait [#allocation3], 128  }
   0x9   :  { %149 = vsyncadd [#allocation3], 4294967168 }
   0xa   :  { %150 = dma.done.wait [#allocation6], 16  }
   0xb   :  { %151 = vsyncadd [#allocation6], 4294967280  ;;  %v40_v0 = vld [vmem:[#allocation2] sm:$0xff]  ;;  %s156_s0 = smov 64   ;;  %vm46_vm0 = vcmask 523264   ;;  %s157_s19 = smov [#allocation7]  }
   0xc   :  { %43 = vrot.lane.b32.xlu0 %v40_v0, %s156_s0  ;;  %v75_v1 = vld [vmem:[#allocation5] ss:$0 sm:$0xff]  ;;  %s58_s20 = sshll.u32 %s157_s19, 4  ;;  %s60_s1 = sshll.u32 %s184_s2, 4  ;;  %s59_s20 = int_to_ptr.vmem [resolvable:$true] %s58_s20  ;;  %s61_s1 = int_to_ptr.hbm [resolvable:$true] %s60_s1 }
  0x7e   :  { %v44_v2 = vpop.permute.xlu0 %43 }
  0x7f   :  { %v47_v3 = vsel %vm46_vm0, %v40_v0, %v44_v2 }
  0x80   :  { %v51_v4 = vadd.f32 %v75_v1, %v47_v3 }
  0x82   :  { %52 = vst [vmem:[#allocation7] sm:$0xff] %v51_v4 }
  0x83   :  { %63 = dma.vmem_to_hbm [thread:$0]  %s59_s20, 128, %s61_s1, [#allocation4]  }
  0x84   :  { %152 = dma.done.wait [#allocation4], 128  }
  0x85   :  { %153 = vsyncadd [#allocation4], 4294967168 }
  0x86   :  { %68 = vsyncpa [#allocation3], 1 }
  0x87   :  { %69 = vsyncpa [#allocation6], 1 }
  0x88   :  { %70 = vsyncpa [#allocation4], 1 }

</bundles_post_ra>
